<compile_context>
chip_gen: v7x
topology: tpu7x:2x2x1
jax: 0.10.0
libtpu: 0.0.40
codegen_flags: <defaults>
</compile_context>

<pallas_src>
import functools

import jax
import jax.numpy as jnp
from jax.experimental import pallas as pl
from jax.experimental.pallas import tpu as pltpu


_LANES = 128
_SUBLANES = 8
_ACC_ROWS = 64          # resident accumulator rows per parallel slot (8 vregs)
_MAX_TILE = 8192        # packed rows per grid step (8192*128*4 B = 4 MiB / block)
_VMEM_LIMIT = 32 * 1024 * 1024
_PAD_ROW = 1e4          # padded rows:  sigmoid -> 0 -> row product 0 -> no contribution
_PAD_FEAT = -1e4        # padded feats: sigmoid -> 1 -> row product unchanged
_FAST_PATH_ELEMS = 1 << 16   # below this, fused XLA beats the pallas launch cost


def _round_up(a, b):
    return ((a + b - 1) // b) * b


def _ceil_div(a, b):
    return -(-a // b)


@functools.lru_cache(maxsize=None)
def _num_tensorcores() -> int:
    """TensorCores per chip: 2 on v7x (megacore split), 1 on v5e/v6e."""
    try:
        dev = jax.devices()[0]
        n = getattr(dev, "num_cores", None)
        if isinstance(n, int) and 1 <= n <= 8:
            return n
        kind = str(getattr(dev, "device_kind", "")).lower()
        if "v7" in kind or "7x" in kind:
            return 2
    except Exception:
        pass
    return 1


def _cp_kernel(alphas_ref, x_ref, part_ref, *, num_shifts):
    """One grid step: accumulate per-row sigmoid products into part_ref."""
    k = pl.program_id(1)

    @pl.when(k == 0)
    def _():
        part_ref[...] = jnp.zeros_like(part_ref)

    a = alphas_ref[...]                       # (1, 128), resident
    x = x_ref[...]                            # (tile, 128), lane-dense
    p = jax.nn.sigmoid((a - x) * 1000.0)      # EUP transcendental

    # Segmented product over each `group`-lane block via a log2(group)
    # roll/multiply tree (XLU rolls + VPU muls).  Afterwards lane
    # (j*group + group - 1) holds prod over group j; the other lanes hold
    # harmless partial/cross-group products in [0, 1] that are masked out
    # in the wrapper (no per-step iota/compare/select here).
    shift = 1
    for _ in range(num_shifts):
        p = p * pltpu.roll(p, shift, axis=1)
        shift *= 2

    # Fold the tile's rows into the resident (_ACC_ROWS, 128) partial block.
    # The reshape only groups consecutive sublane rows (layout-free), so the
    # reduction is 8 independent chains of pure elementwise vreg adds.
    tile = p.shape[0]
    part_ref[...] += p.reshape(tile // _ACC_ROWS, _ACC_ROWS, _LANES).sum(axis=0)


def cp_reference(alphas, pseudo_data, epsilon):
    """Pure-JAX reference of the PyTorch forward (also the small-N fast path)."""
    s = jax.nn.sigmoid((alphas[None, :] - pseudo_data) * 1000.0)
    coverage = jnp.mean(jnp.maximum(jnp.prod(s, axis=1), 0.0))
    return jnp.abs(coverage - 1.0 + epsilon)


def cp_forward(alphas, pseudo_data, epsilon, *, use_pallas=None):
    """Pallas implementation of CP.forward.

    alphas:      (D,) float32 parameter
    pseudo_data: (N, D) float32
    returns:     scalar float32
    """
    n, d = pseudo_data.shape
    assert alphas.shape == (d,)
    # TODO(synk): D > 128 would need the lane product to span multiple 128-lane blocks.
    assert d <= _LANES

    if use_pallas is None:
        use_pallas = (n * d) >= _FAST_PATH_ELEMS
    if not use_pallas:
        # Tiny problem: fixed pallas_call launch + padding cost dominates.
        return cp_reference(alphas.astype(jnp.float32),
                            pseudo_data.astype(jnp.float32),
                            jnp.float32(epsilon))

    num_par = _num_tensorcores()

    # Lane packing: if D divides 128, pack 128//D original rows per 128-lane
    # packed row (a free row-major reshape).  Otherwise pad D up to 128 with a
    # neutral value (sigmoid == 1) and keep one row per packed row.
    pack = _LANES // d if (_LANES % d == 0) else 1
    group = _LANES // pack                    # lanes per original row (power of 2)
    num_shifts = group.bit_length() - 1       # log2(group)

    x = pseudo_data.astype(jnp.float32)
    a = alphas.astype(jnp.float32)
    if d < group:
        x = jnp.pad(x, ((0, 0), (0, group - d)), constant_values=_PAD_FEAT)
        a = jnp.pad(a, (0, group - d))

    # Choose tile / steps so that n_pad == num_par * steps * tile * pack with
    # minimal row padding.  Padded rows use _PAD_ROW -> product exactly 0.
    packed_rows = _ceil_div(n, pack)
    total_steps = num_par * max(1, _ceil_div(packed_rows, num_par * _MAX_TILE))
    tile = min(_MAX_TILE, _round_up(_ceil_div(packed_rows, total_steps), _ACC_ROWS))
    steps = total_steps // num_par
    total_packed = num_par * steps * tile
    n_pad = total_packed * pack
    if n_pad > n:
        x = jnp.pad(x, ((0, n_pad - n), (0, 0)), constant_values=_PAD_ROW)

    xp = x.reshape(total_packed, _LANES)            # free, row-major contiguous
    ap = jnp.tile(a, pack).reshape(1, _LANES)       # alphas replicated per group

    kernel = functools.partial(_cp_kernel, num_shifts=num_shifts)

    partials = pl.pallas_call(
        kernel,
        out_shape=jax.ShapeDtypeStruct((num_par * _ACC_ROWS, _LANES), jnp.float32),
        grid_spec=pltpu.PrefetchScalarGridSpec(
            num_scalar_prefetch=0,
            grid=(num_par, steps),
            in_specs=[
                pl.BlockSpec((1, _LANES), lambda p, k: (0, 0)),                 # alphas
                pl.BlockSpec((tile, _LANES), lambda p, k: (p * steps + k, 0)),  # data rows
            ],
            out_specs=pl.BlockSpec((_ACC_ROWS, _LANES), lambda p, k: (p, 0)),
        ),
        compiler_params=pltpu.CompilerParams(
            dimension_semantics=("parallel", "arbitrary"),
            vmem_limit_bytes=_VMEM_LIMIT,
        ),
    )(ap, xp)

    # Scalar epilogue: keep only the lane holding each group's full product,
    # then mean / abs.  relu omitted: a product of sigmoids is already >= 0.
    lane = jax.lax.broadcasted_iota(jnp.int32, (1, _LANES), 1)
    mask = (lane % group) == (group - 1)
    coverage = jnp.sum(jnp.where(mask, partials, 0.0)) / jnp.float32(n)
    return jnp.abs(coverage - 1.0 + jnp.float32(epsilon))


if __name__ == "__main__":
    key = jax.random.PRNGKey(0)
    k1, k2, k3, k4 = jax.random.split(key, 4)

    # Config A: module config (dimension=32, epsilon=0.1), pack>1 lane packing.
    # alphas / data scaled so per-row sigmoid products land smoothly in (0, 1),
    # making the segmented-product lanes / roll direction actually observable.
    d_a, eps_a, n_a = 32, 0.1, 64
    alphas_a = 0.001 * jax.random.uniform(k1, (d_a,), minval=2.0, maxval=6.0,
                                          dtype=jnp.float32)
    data_a = 0.001 * jax.random.normal(k2, (n_a, d_a), dtype=jnp.float32)
    out_a = jax.block_until_ready(cp_forward(alphas_a, data_a, eps_a, use_pallas=True))
    ref_a = cp_reference(alphas_a, data_a, eps_a)
    assert jnp.allclose(out_a, ref_a, atol=1e-5, rtol=1e-5), (out_a, ref_a)

    # Config B: D that does not divide 128 (pack==1 + feature padding) and a
    # batch that is not a multiple of 8 (row padding path).
    d_b, eps_b, n_b = 20, 0.05, 37
    alphas_b = 0.001 * jax.random.uniform(k3, (d_b,), minval=2.0, maxval=6.0,
                                          dtype=jnp.float32)
    data_b = 0.001 * jax.random.normal(k4, (n_b, d_b), dtype=jnp.float32)
    out_b = jax.block_until_ready(cp_forward(alphas_b, data_b, eps_b, use_pallas=True))
    ref_b = cp_reference(alphas_b, data_b, eps_b)
    assert jnp.allclose(out_b, ref_b, atol=1e-5, rtol=1e-5), (out_b, ref_b)

    # Config C: the module's nominal init (alphas = ones, batch of 8) via the
    # default dispatch (small-N fast path).
    alphas_c = jnp.ones((32,), dtype=jnp.float32)
    data_c = jax.random.normal(k2, (8, 32), dtype=jnp.float32)
    out_c = jax.block_until_ready(cp_forward(alphas_c, data_c, 0.1))
    ref_c = cp_reference(alphas_c, data_c, 0.1)
    assert jnp.allclose(out_c, ref_c, atol=1e-5, rtol=1e-5), (out_c, ref_c)

    print("KERNEL_OK")
</pallas_src>

<mosaic_0001>
module attributes {stable_mosaic.version = 11 : i64} {
  func.func @_cp_kernel(%arg0: i32, %arg1: i32, %arg2: memref<1x128xf32, #tpu.memory_space<vmem>>, %arg3: memref<64x128xf32, #tpu.memory_space<vmem>>, %arg4: memref<64x128xf32, #tpu.memory_space<vmem>>) attributes {dimension_semantics = [#tpu.dimension_semantics<parallel>, #tpu.dimension_semantics<arbitrary>], iteration_bounds = array<i64: 1, 1>, scalar_prefetch = 0 : i64, scratch_operands = 0 : i64, tpu.core_type = #tpu.core_type<tc>, window_params = [{pipeline_mode = #tpu.pipeline_mode<synchronous>, transform_indices = @transform_0, window_bounds = array<i64: 1, 128>}, {transform_indices = @transform_1, window_bounds = array<i64: 64, 128>}, {transform_indices = @transform_2, window_bounds = array<i64: 64, 128>}]} {
    %c0_i32 = arith.constant 0 : i32
    %0 = arith.cmpi eq, %arg1, %c0_i32 : i32
    %1 = arith.extui %0 : i1 to i32
    %c0_i32_0 = arith.constant 0 : i32
    %2 = arith.cmpi ne, %1, %c0_i32_0 : i32
    scf.if %2 {
      %cst_10 = arith.constant 0.000000e+00 : f32
      %29 = vector.broadcast %cst_10 : f32 to vector<64x128xf32>
      %c0_11 = arith.constant 0 : index
      %c0_12 = arith.constant 0 : index
      %30 = vector.load %arg4[%c0_11, %c0_12] : memref<64x128xf32, #tpu.memory_space<vmem>>, vector<64x128xf32>
      tpu.vector_store %arg4[%c0_11, %c0_12], %29 {strides = array<i32>} : memref<64x128xf32, #tpu.memory_space<vmem>>, vector<64x128xf32>,
    } else {
    }
    %c0 = arith.constant 0 : index
    %c0_1 = arith.constant 0 : index
    %3 = vector.load %arg2[%c0, %c0_1] : memref<1x128xf32, #tpu.memory_space<vmem>>, vector<1x128xf32>
    %c0_2 = arith.constant 0 : index
    %c0_3 = arith.constant 0 : index
    %4 = vector.load %arg3[%c0_2, %c0_3] : memref<64x128xf32, #tpu.memory_space<vmem>>, vector<64x128xf32>
    %5 = vector.broadcast %3 : vector<1x128xf32> to vector<64x128xf32>
    %6 = arith.subf %5, %4 : vector<64x128xf32>
    %cst = arith.constant 1.000000e+03 : f32
    %7 = vector.broadcast %cst : f32 to vector<64x128xf32>
    %8 = arith.mulf %6, %7 : vector<64x128xf32>
    %9 = arith.negf %8 : vector<64x128xf32>
    %10 = math.exp %9 : vector<64x128xf32>
    %cst_4 = arith.constant 1.000000e+00 : f32
    %11 = vector.broadcast %cst_4 : f32 to vector<64x128xf32>
    %12 = arith.addf %11, %10 : vector<64x128xf32>
    %13 = arith.divf %11, %12 : vector<64x128xf32>
    %c1_i32 = arith.constant 1 : i32
    %14 = tpu.dynamic_rotate %13 by %c1_i32 dim 1 : vector<64x128xf32>, i32 -> vector<64x128xf32>
    %15 = arith.mulf %13, %14 : vector<64x128xf32>
    %c2_i32 = arith.constant 2 : i32
    %16 = tpu.dynamic_rotate %15 by %c2_i32 dim 1 : vector<64x128xf32>, i32 -> vector<64x128xf32>
    %17 = arith.mulf %15, %16 : vector<64x128xf32>
    %c4_i32 = arith.constant 4 : i32
    %18 = tpu.dynamic_rotate %17 by %c4_i32 dim 1 : vector<64x128xf32>, i32 -> vector<64x128xf32>
    %19 = arith.mulf %17, %18 : vector<64x128xf32>
    %c8_i32 = arith.constant 8 : i32
    %20 = tpu.dynamic_rotate %19 by %c8_i32 dim 1 : vector<64x128xf32>, i32 -> vector<64x128xf32>
    %21 = arith.mulf %19, %20 : vector<64x128xf32>
    %c16_i32 = arith.constant 16 : i32
    %22 = tpu.dynamic_rotate %21 by %c16_i32 dim 1 : vector<64x128xf32>, i32 -> vector<64x128xf32>
    %23 = arith.mulf %21, %22 : vector<64x128xf32>
    %c0_5 = arith.constant 0 : index
    %c0_6 = arith.constant 0 : index
    %24 = vector.load %arg4[%c0_5, %c0_6] : memref<64x128xf32, #tpu.memory_space<vmem>>, vector<64x128xf32>
    %25 = vector.shape_cast %23 : vector<64x128xf32> to vector<1x64x128xf32>
    %cst_7 = arith.constant dense<0.000000e+00> : vector<64x128xf32>
    %26 = vector.multi_reduction <add>, %25, %cst_7 [0] : vector<1x64x128xf32> to vector<64x128xf32>
    %27 = arith.addf %24, %26 : vector<64x128xf32>
    %c0_8 = arith.constant 0 : index
    %c0_9 = arith.constant 0 : index
    %28 = vector.load %arg4[%c0_8, %c0_9] : memref<64x128xf32, #tpu.memory_space<vmem>>, vector<64x128xf32>
    tpu.vector_store %arg4[%c0_8, %c0_9], %27 {strides = array<i32>} : memref<64x128xf32, #tpu.memory_space<vmem>>, vector<64x128xf32>,
    return
  }
  func.func @transform_0(%arg0: i32, %arg1: i32) -> (i32, i32) {
    %c0_i32 = arith.constant 0 : i32
    %c0_i32_0 = arith.constant 0 : i32
    %c0_i32_1 = arith.constant 0 : i32
    return %c0_i32, %c0_i32_0 : i32, i32
  }
  func.func @transform_1(%arg0: i32, %arg1: i32) -> (i32, i32) {
    %c1_i32 = arith.constant 1 : i32
    %0 = arith.muli %arg0, %c1_i32 : i32
    %1 = arith.addi %0, %arg1 : i32
    %c0_i32 = arith.constant 0 : i32
    %c0_i32_0 = arith.constant 0 : i32
    return %1, %c0_i32 : i32, i32
  }
  func.func @transform_2(%arg0: i32, %arg1: i32) -> (i32, i32) {
    %c0_i32 = arith.constant 0 : i32
    %c0_i32_0 = arith.constant 0 : i32
    return %arg0, %c0_i32 : i32, i32
  }
}

</mosaic_0001>

<bundles_post_ra>
// kernel: tpu_custom_call.1
= control target key start
LH: loop header
LB: loop body
LE: loop exit
PB: predicated region body
PF: predicated region fallthrough
CT: control target
= control target key end

     0   :  { %7 = vsyncpa [#allocation3], 0  ;;  %s509_s0 = inlined_call_operand.hbm [shape: f32[1,128], index: 0, kind: input, shape index: {}]   ;;  %s510_s1 = inlined_call_operand.hbm [shape: f32[64,128], index: 1, kind: input, shape index: {}]   ;;  %s511_s2 = inlined_call_operand.hbm [shape: f32[64,128], index: 2, kind: output, shape index: {}]  }
   0x1   :  { %8 = vsyncpa [#allocation6], 0 }
   0x2   :  { %9 = vsyncpa [#allocation4], 0  ;;  %s428_s9 = smov [#allocation2]   ;;  %s429_s11 = smov [#allocation5]  }
   0x3   :  { %s16_s10 = sshll.u32 %s428_s9, 4  ;;  %s29_s12 = sshll.u32 %s429_s11, 4  ;;  %s17_s10 = int_to_ptr.vmem [resolvable:$true] %s16_s10  ;;  %s452_s12 = int_to_ptr.vmem [resolvable:$true] %s29_s12 }
   0x4   :  { %s356_s15 = scalar_lea.hbm %s509_s0, 16 }
   0x5   :  { %p357_p0 = scmp.ne.s32.totalorder %s509_s0, %s356_s15  ;;  %p360_p1 = scmp.lt.u32.totalorder %s356_s15, %s509_s0 }
   0x7   :  { %p362_p2 = pnand %p360_p1, %p357_p0 }
   0x9   :  { %365 = shalt.err (!%p362_p2)
}
   0xa   :  { %s366_s20 = scalar_lea.vmem %s17_s10, 16  ;;  %s370_s21 = scalar_lea.vmem %s17_s10, 32 }
   0xb   :  { %p367_p3 = scmp.ne.s32.totalorder %s17_s10, %s366_s20  ;;  %p371_p4 = scmp.lt.s32.totalorder %s17_s10, %s17_s10 }
   0xc   :  { %p372_p5 = scmp.lt.s32.totalorder %s370_s21, %s366_s20 }
   0xe   :  { %p373_p6 = por %p372_p5, %p371_p4 }
  0x10   :  { %p374_p7 = pnand %p373_p6, %p367_p3 }
  0x12   :  { %377 = shalt.err (!%p374_p7)
}
  0x13   :  { %19 = dma.hbm_to_vmem [thread:$0]  %s509_s0, 16, %s17_s10, [#allocation3]  }
  0x14   :  { %s378_s26 = scalar_lea.hbm %s510_s1, 1024 }
  0x15   :  { %p379_p8 = scmp.ne.s32.totalorder %s510_s1, %s378_s26  ;;  %p382_p9 = scmp.lt.u32.totalorder %s378_s26, %s510_s1 }
  0x17   :  { %p384_p10 = pnand %p382_p9, %p379_p8 }
  0x19   :  { %387 = shalt.err (!%p384_p10)
}
  0x1a   :  { %s388_s3 = scalar_lea.vmem %s452_s12, 1024  ;;  %p393_p12 = scmp.lt.s32.totalorder %s452_s12, %s452_s12 }
  0x1b   :  { %p389_p11 = scmp.ne.s32.totalorder %s452_s12, %s388_s3  ;;  %p394_p13 = scmp.lt.s32.totalorder %s388_s3, %s388_s3 }
  0x1d   :  { %p395_p0 = por %p394_p13, %p393_p12 }
  0x1f   :  { %p396_p1 = pnand %p395_p0, %p389_p11 }
  0x21   :  { %399 = shalt.err (!%p396_p1)
}
  0x22   :  { %s430_s0 = smov 128   ;;  %s431_s4 = smov 8  }
  0x23   :  { %35 = dma.hbm_to_vmem [thread:$0]  %s510_s1, 1024, %s452_s12, [#allocation6], %s430_s0, %s430_s0, %s431_s4  }
  0x24   :  { %422 = dma.done.wait [#allocation3], 16  }
  0x25   :  { %423 = vsyncadd [#allocation3], 4294967280 }
  0x26   :  { %424 = dma.done.wait [#allocation6], 1024  }
  0x27   :  { %425 = vsyncadd [#allocation6], 4294966272  ;;  %v305_v0 = vld [vmem:[#allocation2] ss:$0 sm:$0xff]  ;;  %v57_v1 = vld [vmem:[#allocation5] sm:$0xff]  ;;  %s432_s1 = smov 1  }
  0x28   :  { %v59_v2 = vld [vmem:[#allocation5 + $0x10] sm:$0xff]  ;;  %v71_v3 = vsub.f32 %v305_v0, %v57_v1  ;;  %v58_v5 = vld [vmem:[#allocation5 + $0x8] sm:$0xff]  ;;  %v60_v6 = vld [vmem:[#allocation5 + $0x18] sm:$0xff]  ;;  %s433_s7 = smov 2   ;;  %s434_s8 = smov 4  }
  0x29   :  { %v73_v4 = vsub.f32 %v305_v0, %v59_v2  ;;  %v61_v7 = vld [vmem:[#allocation5 + $0x20] sm:$0xff]  ;;  %v72_v8 = vsub.f32 %v305_v0, %v58_v5  ;;  %v74_v9 = vsub.f32 %v305_v0, %v60_v6  ;;  %v62_v11 = vld [vmem:[#allocation5 + $0x28] sm:$0xff]  ;;  %v63_v12 = vld [vmem:[#allocation5 + $0x30] sm:$0xff]  ;;  %s435_s9 = smov 16   ;;  %s436_s10 = smov [#allocation7]  }
  0x2a   :  { %v75_v10 = vsub.f32 %v305_v0, %v61_v7  ;;  %v64_v13 = vld [vmem:[#allocation5 + $0x38] sm:$0xff]  ;;  %v306_v14 = vmul.f32 -1000.0, %v71_v3  ;;  %v76_v16 = vsub.f32 %v305_v0, %v62_v11  ;;  %v77_v17 = vsub.f32 %v305_v0, %v63_v12  ;;  %s292_s11 = sshll.u32 %s436_s10, 4  ;;  %s293_s11 = int_to_ptr.vmem [resolvable:$true] %s292_s11 }
  0x2b   :  { %v308_v15 = vmul.f32 -1000.0, %v73_v4  ;;  %v307_v18 = vmul.f32 -1000.0, %v72_v8  ;;  %v309_v19 = vmul.f32 -1000.0, %v74_v9  ;;  %v78_v21 = vsub.f32 %v305_v0, %v64_v13  ;;  %s400_s12 = scalar_lea.vmem %s293_s11, 1024  ;;  %p405_p3 = scmp.lt.s32.totalorder %s293_s11, %s293_s11 }
  0x2c   :  { %v310_v20 = vmul.f32 -1000.0, %v75_v10  ;;  %v95_v22 = vmul.f32 1.442695, %v306_v14  ;;  %v311_v24 = vmul.f32 -1000.0, %v76_v16  ;;  %v312_v25 = vmul.f32 -1000.0, %v77_v17  ;;  %p401_p2 = scmp.ne.s32.totalorder %s293_s11, %s400_s12  ;;  %p406_p4 = scmp.lt.s32.totalorder %s400_s12, %s400_s12 }
  0x2d   :  { %v99_v23 = vmul.f32 1.442695, %v308_v15  ;;  %v97_v26 = vmul.f32 1.442695, %v307_v18  ;;  %v101_v27 = vmul.f32 1.442695, %v309_v19 }
  0x2e   :  { %324 = vpow2.f32 %v95_v22  ;;  %v103_v28 = vmul.f32 1.442695, %v310_v20  ;;  %v313_v29 = vmul.f32 -1000.0, %v78_v21  ;;  %v105_v30 = vmul.f32 1.442695, %v311_v24  ;;  %p407_p5 = por %p406_p4, %p405_p3 }
  0x2f   :  { %326 = vpow2.f32 %v99_v23  ;;  %v107_v31 = vmul.f32 1.442695, %v312_v25 }
  0x30   :  { %328 = vpow2.f32 %v97_v26  ;;  %v109_v32 = vmul.f32 1.442695, %v313_v29  ;;  %p408_p6 = pnand %p407_p5, %p401_p2 }
  0x31   :  { %330 = vpow2.f32 %v101_v27 }
  0x32   :  { %332 = vpow2.f32 %v103_v28 }
  0x33   :  { %334 = vpow2.f32 %v105_v30 }
  0x34   :  { %336 = vpow2.f32 %v107_v31 }
  0x35   :  { %338 = vpow2.f32 %v109_v32 }
  0x38   :  { %v325_v33 = vpop.eup %324 }
  0x39   :  { %v327_v34 = vpop.eup %326  ;;  %v111_v35 = vadd.f32 1.0, %v325_v33 }
  0x3a   :  { %v329_v36 = vpop.eup %328  ;;  %v113_v37 = vadd.f32 1.0, %v327_v34 }
  0x3b   :  { %v331_v38 = vpop.eup %330  ;;  %340 = vrcp.f32 %v111_v35  ;;  %v112_v39 = vadd.f32 1.0, %v329_v36 }
  0x3c   :  { %v333_v40 = vpop.eup %332  ;;  %342 = vrcp.f32 %v113_v37  ;;  %v114_v41 = vadd.f32 1.0, %v331_v38 }
  0x3d   :  { %v335_v42 = vpop.eup %334  ;;  %344 = vrcp.f32 %v112_v39  ;;  %v115_v43 = vadd.f32 1.0, %v333_v40 }
  0x3e   :  { %v337_v44 = vpop.eup %336  ;;  %346 = vrcp.f32 %v114_v41  ;;  %v116_v45 = vadd.f32 1.0, %v335_v42 }
  0x3f   :  { %v339_v46 = vpop.eup %338  ;;  %348 = vrcp.f32 %v115_v43  ;;  %v117_v47 = vadd.f32 1.0, %v337_v44 }
  0x40   :  { %350 = vrcp.f32 %v116_v45  ;;  %v118_v48 = vadd.f32 1.0, %v339_v46 }
  0x41   :  { %352 = vrcp.f32 %v117_v47 }
  0x42   :  { %354 = vrcp.f32 %v118_v48 }
  0x45   :  { %v341_v49 = vpop.eup %340 }
  0x46   :  { %v343_v50 = vpop.eup %342  ;;  %135 = vrot.lane.b32.xlu0 %v341_v49, %s432_s1 }
  0x47   :  { %v345_v51 = vpop.eup %344  ;;  %139 = vrot.lane.b32.xlu1 %v343_v50, %s432_s1 }
  0x48   :  { %v347_v52 = vpop.eup %346 }
  0x49   :  { %v349_v53 = vpop.eup %348 }
  0x4a   :  { %137 = vrot.lane.b32.xlu0 %v345_v51, %s432_s1  ;;  %v351_v54 = vpop.eup %350 }
  0x4b   :  { %141 = vrot.lane.b32.xlu1 %v347_v52, %s432_s1  ;;  %v353_v55 = vpop.eup %352 }
  0x4c   :  { %v355_v56 = vpop.eup %354 }
  0x4e   :  { %143 = vrot.lane.b32.xlu0 %v349_v53, %s432_s1 }
  0x4f   :  { %145 = vrot.lane.b32.xlu1 %v351_v54, %s432_s1 }
  0x52   :  { %147 = vrot.lane.b32.xlu0 %v353_v55, %s432_s1 }
  0x53   :  { %149 = vrot.lane.b32.xlu1 %v355_v56, %s432_s1 }
  0xb8   :  { %v136_v57 = vpop.permute.xlu0 %135 }
  0xb9   :  { %v151_v58 = vmul.f32 %v341_v49, %v136_v57  ;;  %v140_v59 = vpop.permute.xlu1 %139 }
  0xba   :  { %v153_v60 = vmul.f32 %v343_v50, %v140_v59 }
  0xbb   :  { %159 = vrot.lane.b32.xlu0 %v151_v58, %s433_s7 }
  0xbc   :  { %v138_v61 = vpop.permute.xlu0 %137 }
  0xbd   :  { %v152_v62 = vmul.f32 %v345_v51, %v138_v61  ;;  %v142_v63 = vpop.permute.xlu1 %141 }
  0xbe   :  { %v154_v0 = vmul.f32 %v347_v52, %v142_v63 }
  0xbf   :  { %163 = vrot.lane.b32.xlu0 %v153_v60, %s433_s7  ;;  %161 = vrot.lane.b32.xlu1 %v152_v62, %s433_s7 }
  0xc0   :  { %v144_v1 = vpop.permute.xlu0 %143 }
  0xc1   :  { %v155_v2 = vmul.f32 %v349_v53, %v144_v1  ;;  %v146_v3 = vpop.permute.xlu1 %145 }
  0xc2   :  { %v156_v4 = vmul.f32 %v351_v54, %v146_v3 }
  0xc3   :  { %165 = vrot.lane.b32.xlu1 %v154_v0, %s433_s7  ;;  %167 = vrot.lane.b32.xlu0 %v155_v2, %s433_s7 }
  0xc4   :  { %v148_v5 = vpop.permute.xlu0 %147 }
  0xc5   :  { %v157_v6 = vmul.f32 %v353_v55, %v148_v5  ;;  %v150_v7 = vpop.permute.xlu1 %149 }
  0xc6   :  { %v158_v8 = vmul.f32 %v355_v56, %v150_v7 }
  0xc7   :  { %169 = vrot.lane.b32.xlu1 %v156_v4, %s433_s7  ;;  %171 = vrot.lane.b32.xlu0 %v157_v6, %s433_s7 }
  0xcb   :  { %173 = vrot.lane.b32.xlu1 %v158_v8, %s433_s7 }
 0x12d   :  { %v160_v9 = vpop.permute.xlu0 %159 }
 0x12e   :  { %v175_v10 = vmul.f32 %v160_v9, %v151_v58 }
 0x130   :  { %183 = vrot.lane.b32.xlu0 %v175_v10, %s434_s8 }
 0x131   :  { %v162_v11 = vpop.permute.xlu1 %161  ;;  %v164_v12 = vpop.permute.xlu0 %163 }
 0x132   :  { %v176_v13 = vmul.f32 %v162_v11, %v152_v62  ;;  %v177_v14 = vmul.f32 %v164_v12, %v153_v60 }
 0x134   :  { %185 = vrot.lane.b32.xlu1 %v176_v13, %s434_s8  ;;  %187 = vrot.lane.b32.xlu0 %v177_v14, %s434_s8 }
 0x135   :  { %v166_v15 = vpop.permute.xlu1 %165  ;;  %v168_v16 = vpop.permute.xlu0 %167 }
 0x136   :  { %v178_v17 = vmul.f32 %v166_v15, %v154_v0  ;;  %v179_v18 = vmul.f32 %v168_v16, %v155_v2 }
 0x138   :  { %189 = vrot.lane.b32.xlu1 %v178_v17, %s434_s8  ;;  %191 = vrot.lane.b32.xlu0 %v179_v18, %s434_s8 }
 0x139   :  { %v170_v19 = vpop.permute.xlu1 %169  ;;  %v172_v20 = vpop.permute.xlu0 %171 }
 0x13a   :  { %v180_v21 = vmul.f32 %v170_v19, %v156_v4  ;;  %v181_v22 = vmul.f32 %v172_v20, %v157_v6 }
 0x13c   :  { %193 = vrot.lane.b32.xlu1 %v180_v21, %s434_s8  ;;  %195 = vrot.lane.b32.xlu0 %v181_v22, %s434_s8 }
 0x13d   :  { %v174_v23 = vpop.permute.xlu1 %173 }
 0x13e   :  { %v182_v24 = vmul.f32 %v174_v23, %v158_v8 }
 0x140   :  { %197 = vrot.lane.b32.xlu1 %v182_v24, %s434_s8 }
 0x1a2   :  { %v184_v25 = vpop.permute.xlu0 %183 }
 0x1a3   :  { %v199_v26 = vmul.f32 %v184_v25, %v175_v10 }
 0x1a5   :  { %207 = vrot.lane.b32.xlu0 %v199_v26, %s431_s4 }
 0x1a6   :  { %v186_v27 = vpop.permute.xlu1 %185  ;;  %v188_v28 = vpop.permute.xlu0 %187 }
 0x1a7   :  { %v200_v29 = vmul.f32 %v186_v27, %v176_v13  ;;  %v201_v30 = vmul.f32 %v188_v28, %v177_v14 }
 0x1a9   :  { %209 = vrot.lane.b32.xlu1 %v200_v29, %s431_s4  ;;  %211 = vrot.lane.b32.xlu0 %v201_v30, %s431_s4 }
 0x1aa   :  { %v190_v31 = vpop.permute.xlu1 %189  ;;  %v192_v32 = vpop.permute.xlu0 %191 }
 0x1ab   :  { %v202_v33 = vmul.f32 %v190_v31, %v178_v17  ;;  %v203_v34 = vmul.f32 %v192_v32, %v179_v18 }
 0x1ad   :  { %213 = vrot.lane.b32.xlu1 %v202_v33, %s431_s4  ;;  %215 = vrot.lane.b32.xlu0 %v203_v34, %s431_s4 }
 0x1ae   :  { %v194_v35 = vpop.permute.xlu1 %193  ;;  %v196_v36 = vpop.permute.xlu0 %195 }
 0x1af   :  { %v204_v37 = vmul.f32 %v194_v35, %v180_v21  ;;  %v205_v38 = vmul.f32 %v196_v36, %v181_v22 }
 0x1b1   :  { %217 = vrot.lane.b32.xlu1 %v204_v37, %s431_s4  ;;  %219 = vrot.lane.b32.xlu0 %v205_v38, %s431_s4 }
 0x1b2   :  { %v198_v39 = vpop.permute.xlu1 %197 }
 0x1b3   :  { %v206_v40 = vmul.f32 %v198_v39, %v182_v24 }
 0x1b5   :  { %221 = vrot.lane.b32.xlu1 %v206_v40, %s431_s4 }
 0x217   :  { %v208_v41 = vpop.permute.xlu0 %207 }
 0x218   :  { %v223_v42 = vmul.f32 %v208_v41, %v199_v26 }
 0x21a   :  { %231 = vrot.lane.b32.xlu0 %v223_v42, %s435_s9 }
 0x21b   :  { %v210_v43 = vpop.permute.xlu1 %209  ;;  %v212_v44 = vpop.permute.xlu0 %211 }
 0x21c   :  { %v224_v45 = vmul.f32 %v210_v43, %v200_v29  ;;  %v225_v46 = vmul.f32 %v212_v44, %v201_v30 }
 0x21e   :  { %233 = vrot.lane.b32.xlu1 %v224_v45, %s435_s9  ;;  %235 = vrot.lane.b32.xlu0 %v225_v46, %s435_s9 }
 0x21f   :  { %v214_v47 = vpop.permute.xlu1 %213  ;;  %v216_v48 = vpop.permute.xlu0 %215 }
 0x220   :  { %v226_v49 = vmul.f32 %v214_v47, %v202_v33  ;;  %v227_v50 = vmul.f32 %v216_v48, %v203_v34 }
 0x222   :  { %237 = vrot.lane.b32.xlu1 %v226_v49, %s435_s9  ;;  %239 = vrot.lane.b32.xlu0 %v227_v50, %s435_s9 }
 0x223   :  { %v218_v51 = vpop.permute.xlu1 %217  ;;  %v220_v52 = vpop.permute.xlu0 %219 }
 0x224   :  { %v228_v53 = vmul.f32 %v218_v51, %v204_v37  ;;  %v229_v54 = vmul.f32 %v220_v52, %v205_v38 }
 0x226   :  { %241 = vrot.lane.b32.xlu1 %v228_v53, %s435_s9  ;;  %243 = vrot.lane.b32.xlu0 %v229_v54, %s435_s9 }
 0x227   :  { %v222_v55 = vpop.permute.xlu1 %221 }
 0x228   :  { %v230_v56 = vmul.f32 %v222_v55, %v206_v40 }
 0x22a   :  { %245 = vrot.lane.b32.xlu1 %v230_v56, %s435_s9 }
 0x28c   :  { %v232_v57 = vpop.permute.xlu0 %231 }
 0x28d   :  { %v247_v58 = vmul.f32 %v232_v57, %v223_v42 }
 0x28f   :  { %279 = vst [vmem:[#allocation7] sm:$0xff] %v247_v58 }
 0x290   :  { %v234_v59 = vpop.permute.xlu1 %233  ;;  %v236_v60 = vpop.permute.xlu0 %235 }
 0x291   :  { %v248_v61 = vmul.f32 %v234_v59, %v224_v45  ;;  %v249_v62 = vmul.f32 %v236_v60, %v225_v46 }
 0x293   :  { %280 = vst [vmem:[#allocation7 + $0x8] sm:$0xff] %v248_v61  ;;  %281 = vst [vmem:[#allocation7 + $0x10] sm:$0xff] %v249_v62 }
 0x294   :  { %v238_v63 = vpop.permute.xlu1 %237  ;;  %v240_v0 = vpop.permute.xlu0 %239 }
 0x295   :  { %v250_v1 = vmul.f32 %v238_v63, %v226_v49  ;;  %v251_v2 = vmul.f32 %v240_v0, %v227_v50 }
 0x297   :  { %282 = vst [vmem:[#allocation7 + $0x18] sm:$0xff] %v250_v1  ;;  %283 = vst [vmem:[#allocation7 + $0x20] sm:$0xff] %v251_v2 }
 0x298   :  { %v242_v3 = vpop.permute.xlu1 %241  ;;  %v244_v4 = vpop.permute.xlu0 %243 }
 0x299   :  { %v252_v5 = vmul.f32 %v242_v3, %v228_v53  ;;  %v253_v6 = vmul.f32 %v244_v4, %v229_v54 }
 0x29b   :  { %284 = vst [vmem:[#allocation7 + $0x28] sm:$0xff] %v252_v5  ;;  %285 = vst [vmem:[#allocation7 + $0x30] sm:$0xff] %v253_v6 }
 0x29c   :  { %v246_v7 = vpop.permute.xlu1 %245 }
 0x29d   :  { %v254_v8 = vmul.f32 %v246_v7, %v230_v56 }
 0x29f   :  { %286 = vst [vmem:[#allocation7 + $0x38] sm:$0xff] %v254_v8 }
 0x2a0   :  { %411 = shalt.err (!%p408_p6)
}
 0x2a1   :  { %s412_s15 = scalar_lea.hbm %s511_s2, 1024 }
 0x2a2   :  { %p413_p7 = scmp.ne.s32.totalorder %s511_s2, %s412_s15  ;;  %p416_p8 = scmp.lt.u32.totalorder %s412_s15, %s511_s2 }
 0x2a4   :  { %p418_p9 = pnand %p416_p8, %p413_p7 }
 0x2a6   :  { %421 = shalt.err (!%p418_p9)
}
 0x2a7   :  { %298 = dma.vmem_to_hbm [thread:$0]  %s293_s11, 1024, %s511_s2, [#allocation4], %s430_s0, %s430_s0, %s431_s4  }
 0x2a8   :  { %426 = dma.done.wait [#allocation4], 1024  }
 0x2a9   :  { %427 = vsyncadd [#allocation4], 4294966272 }
 0x2aa   :  { %302 = vsyncpa [#allocation3], 1 }
 0x2ab   :  { %303 = vsyncpa [#allocation6], 1 }
 0x2ac   :  { %304 = vsyncpa [#allocation4], 1 }

</bundles_post_ra>
